<compile_context>
chip_gen: v7x
topology: tpu7x:2x2x1
jax: 0.10.0
libtpu: 0.0.40
codegen_flags: <defaults>
</compile_context>

<pallas_src>
import functools

import jax
import jax.numpy as jnp
from jax.experimental import pallas as pl
from jax.experimental.pallas import tpu as pltpu

EPS = 0.01


def _flow_kernel(n_relu_layers, x_ref, *refs):
    """refs = (w0, b0, w1, b1, ..., wL, bL, out_ref).

    Weights are bf16 [out, in] (PyTorch layout; w0 padded with a zero column
    for x1), biases are f32 [out, 1] columns.  n_relu_layers = 1 + num_layers
    (layers followed by ReLU); the last (w, b) pair is the final Linear(H, 1).
    """
    out_ref = refs[-1]
    wb = refs[:-1]

    # (tb, dim) natural tile -> (dim, tb): batch on the 128-wide lane axis.
    # dim is tiny (e.g. 5) so this is a handful of XLU ops (XLU is otherwise
    # idle in this kernel).
    # TODO(synk): confirm in the Mosaic dump this transpose does not
    # materialize a large padded VMEM copy; if it does, fall back to a
    # wrapper-side transpose.
    xT = x_ref[...].astype(jnp.float32).T         # [dim, tb]
    x1 = xT[:1, :]                                # [1, tb] (kept exact f32)

    h = xT                                        # layer-0 W has a zero column for x1
    for li in range(n_relu_layers):
        w = wb[2 * li][...]                       # bf16 [out, in]
        b = wb[2 * li + 1][...]                   # f32  [out, 1] -> lane broadcast
        h = jnp.dot(w, h.astype(jnp.bfloat16),
                    preferred_element_type=jnp.float32) + b
        h = jnp.maximum(h, 0.0)

    # Final Linear(H, 1): lane-kept [1, H] @ [H, tb] (no degenerate N=1 matmul).
    w_last = wb[2 * n_relu_layers][...]           # bf16 [1, H]
    b_last = wb[2 * n_relu_layers + 1][...]       # f32  [1, 1]
    g = jnp.dot(w_last, h.astype(jnp.bfloat16),
                preferred_element_type=jnp.float32) + b_last   # [1, tb]

    # y1 = x1 / (eps + g^2); approx reciprocal runs on the (idle) EUP slot.
    out_ref[...] = (x1 * pl.reciprocal(EPS + g * g, approx=True)).astype(out_ref.dtype)


def _pick_tb(B):
    # Prefer 1024/2048/512 tiles (balances grid-step overhead vs vreg spill of
    # the [32, tb] f32 activations), with an even grid count (>=4 when
    # possible) so the two v7x TensorCores stay balanced.
    preferred = (1024, 2048, 512, 256, 128)
    for want_steps in (4, 2):
        for tb in preferred:
            if B % tb == 0:
                steps = B // tb
                if steps >= want_steps and steps % 2 == 0:
                    return tb
    for tb in preferred:
        if B % tb == 0:
            return tb
    return B  # whole batch as one tile (block == full array extent)


@functools.partial(jax.jit, static_argnames=("tb",), donate_argnums=(0,))
def flow_lr_flow_forward(x, weights, biases, tb=None):
    """Pallas implementation of flowLRflow.forward (== bER).

    weights[i]: [out_i, in_i] (PyTorch layout), biases[i]: [out_i, 1].
    x is donated: the y1 column is written in place, x2 passes through.
    """
    B, dim = x.shape
    if tb is None:
        tb = _pick_tb(B)
    assert B % tb == 0, "batch must be divisible by the batch tile"
    n_pairs = len(weights)
    n_relu_layers = n_pairs - 1
    hidden = weights[0].shape[0]

    # Parameter prep (tiny, fused into the jit):
    #  - pad layer-0 with a zero column so the whole (dim, tb) tile feeds it,
    #  - cast weights to bf16 so bf16 is what is DMA'd / held in VMEM.
    w0 = jnp.concatenate(
        [jnp.zeros((hidden, 1), weights[0].dtype), weights[0]], axis=1)
    kernel_weights = [w0.astype(jnp.bfloat16)] + [
        w.astype(jnp.bfloat16) for w in weights[1:]]
    kernel_biases = [b.astype(jnp.float32) for b in biases]

    in_specs = [pl.BlockSpec((tb, dim), lambda i: (i, 0))]
    args = [x]
    for w, b in zip(kernel_weights, kernel_biases):
        in_specs.append(pl.BlockSpec(w.shape, lambda i: (0, 0)))  # constant block
        in_specs.append(pl.BlockSpec(b.shape, lambda i: (0, 0)))
        args += [w, b]

    itemsize = x.dtype.itemsize
    param_bytes = sum(int(a.size) * a.dtype.itemsize for a in args[1:])
    flops = 2 * B * (dim * hidden
                     + max(n_pairs - 2, 0) * hidden * hidden
                     + hidden) + 4 * B
    cost = pl.CostEstimate(
        flops=int(flops),
        transcendentals=0,
        bytes_accessed=int(B * dim * itemsize + B * itemsize + param_bytes),
    )

    y1_row = pl.pallas_call(
        functools.partial(_flow_kernel, n_relu_layers),
        out_shape=jax.ShapeDtypeStruct((1, B), x.dtype),
        grid=(B // tb,),
        in_specs=in_specs,
        out_specs=pl.BlockSpec((1, tb), lambda i: (0, i)),
        compiler_params=pltpu.CompilerParams(dimension_semantics=("parallel",)),
        cost_estimate=cost,
    )(*args)

    # x2 (columns 1:) is a pure pass-through.  With x donated, this is an
    # in-place column write (4*B bytes) instead of a full-array concatenate.
    return jax.lax.dynamic_update_slice(
        x, y1_row.reshape(B, 1).astype(x.dtype), (0, 0))


def _reference_forward(x, weights, biases):
    """Pure-JAX f32 reference mirroring bER semantics."""
    x1, x2 = x[:, :1], x[:, 1:]
    h = x2.astype(jnp.float32)
    for w, b in zip(weights[:-1], biases[:-1]):
        h = jnp.maximum(h @ w.T + b.T, 0.0)
    g = h @ weights[-1].T + biases[-1].T
    y1 = x1.astype(jnp.float32) / (EPS + g * g)
    return jnp.concatenate([y1, x2.astype(jnp.float32)], axis=1).astype(x.dtype)


def _init_params(key, dim, hidden_dim, num_layers):
    """Shapes matching build_relu(dim-1, H, L): weights [out, in], biases [out, 1]."""
    sizes = [(hidden_dim, dim - 1)]
    for _ in range(num_layers):
        sizes.append((hidden_dim, hidden_dim))
    sizes.append((1, hidden_dim))

    weights, biases = [], []
    for (fan_out, fan_in) in sizes:
        key, kw, kb = jax.random.split(key, 3)
        bound = 1.0 / jnp.sqrt(fan_in)
        w = jax.random.uniform(kw, (fan_out, fan_in), jnp.float32, -bound, bound)
        b = jax.random.uniform(kb, (fan_out, 1), jnp.float32, -bound, bound)
        weights.append(w)
        biases.append(b)
    return weights, biases


if __name__ == "__main__":
    dim = 5            # 1 "flow" column + (dim-1)=4 conditioning features
    hidden_dim = 32
    num_layers = 2
    B = 256            # -> tb=128, grid=(2,): lane-aligned, even step count

    key = jax.random.PRNGKey(0)
    key, kx = jax.random.split(key)
    x = jax.random.normal(kx, (B, dim), jnp.float32)

    weights, biases = _init_params(key, dim, hidden_dim, num_layers)

    # Reference BEFORE the kernel call: x is donated to the kernel wrapper.
    ref = _reference_forward(x, weights, biases)

    out = flow_lr_flow_forward(x, weights, biases)
    out = jax.block_until_ready(out)

    assert out.shape == (B, dim)
    # x2 columns are a pure pass-through -> exact.
    assert jnp.array_equal(out[:, 1:], ref[:, 1:]), "pass-through mismatch"
    # y1 column: bf16 matmuls (f32 accumulate) + approx reciprocal -> relaxed tol.
    assert jnp.allclose(out[:, :1], ref[:, :1], atol=5e-2, rtol=5e-2), \
        "y1 mismatch vs reference"

    print("KERNEL_OK")
</pallas_src>

<mosaic_0001>
module attributes {stable_mosaic.version = 11 : i64} {
  func.func @_flow_kernel(%arg0: i32, %arg1: memref<128x5xf32, #tpu.memory_space<vmem>>, %arg2: memref<32x5xbf16, #tpu.memory_space<vmem>>, %arg3: memref<32x1xf32, #tpu.memory_space<vmem>>, %arg4: memref<32x32xbf16, #tpu.memory_space<vmem>>, %arg5: memref<32x1xf32, #tpu.memory_space<vmem>>, %arg6: memref<32x32xbf16, #tpu.memory_space<vmem>>, %arg7: memref<32x1xf32, #tpu.memory_space<vmem>>, %arg8: memref<1x32xbf16, #tpu.memory_space<vmem>>, %arg9: memref<1x1xf32, #tpu.memory_space<vmem>>, %arg10: memref<1x128xf32, #tpu.memory_space<vmem>>) attributes {dimension_semantics = [#tpu.dimension_semantics<parallel>], iteration_bounds = array<i64: 2>, scalar_prefetch = 0 : i64, scratch_operands = 0 : i64, tpu.core_type = #tpu.core_type<tc>, window_params = [{transform_indices = @transform_0, window_bounds = array<i64: 128, 5>}, {pipeline_mode = #tpu.pipeline_mode<synchronous>, transform_indices = @transform_1, window_bounds = array<i64: 32, 5>}, {pipeline_mode = #tpu.pipeline_mode<synchronous>, transform_indices = @transform_2, window_bounds = array<i64: 32, 1>}, {pipeline_mode = #tpu.pipeline_mode<synchronous>, transform_indices = @transform_3, window_bounds = array<i64: 32, 32>}, {pipeline_mode = #tpu.pipeline_mode<synchronous>, transform_indices = @transform_4, window_bounds = array<i64: 32, 1>}, {pipeline_mode = #tpu.pipeline_mode<synchronous>, transform_indices = @transform_5, window_bounds = array<i64: 32, 32>}, {pipeline_mode = #tpu.pipeline_mode<synchronous>, transform_indices = @transform_6, window_bounds = array<i64: 32, 1>}, {pipeline_mode = #tpu.pipeline_mode<synchronous>, transform_indices = @transform_7, window_bounds = array<i64: 1, 32>}, {pipeline_mode = #tpu.pipeline_mode<synchronous>, transform_indices = @transform_8, window_bounds = array<i64: 1, 1>}, {transform_indices = @transform_9, window_bounds = array<i64: 1, 128>}]} {
    %c0 = arith.constant 0 : index
    %c0_0 = arith.constant 0 : index
    %0 = vector.load %arg1[%c0, %c0_0] : memref<128x5xf32, #tpu.memory_space<vmem>>, vector<128x5xf32>
    %1 = tpu.transpose %0, [1, 0] : vector<128x5xf32> -> vector<5x128xf32>
    %2 = vector.extract_strided_slice %1 {offsets = [0, 0], sizes = [1, 128], strides = [1, 1]} : vector<5x128xf32> to vector<1x128xf32>
    %c0_1 = arith.constant 0 : index
    %c0_2 = arith.constant 0 : index
    %3 = vector.load %arg2[%c0_1, %c0_2] : memref<32x5xbf16, #tpu.memory_space<vmem>>, vector<32x5xbf16>
    %c0_3 = arith.constant 0 : index
    %c0_4 = arith.constant 0 : index
    %4 = vector.load %arg3[%c0_3, %c0_4] : memref<32x1xf32, #tpu.memory_space<vmem>>, vector<32x1xf32>
    %5 = arith.truncf %1 : vector<5x128xf32> to vector<5x128xbf16>
    %cst = arith.constant dense<0.000000e+00> : vector<32x128xf32>
    %6 = tpu.matmul %3, %5, %cst {dimension_numbers = #tpu.dot_dimension_numbers<[1], [0], [0], [1], [0, 0, 1, 1], [], []>} : vector<32x5xbf16>, vector<5x128xbf16>, vector<32x128xf32> -> vector<32x128xf32>
    %7 = vector.broadcast %4 : vector<32x1xf32> to vector<32x128xf32>
    %8 = arith.addf %6, %7 : vector<32x128xf32>
    %cst_5 = arith.constant 0.000000e+00 : f32
    %9 = vector.broadcast %cst_5 : f32 to vector<32x128xf32>
    %10 = arith.maximumf %8, %9 : vector<32x128xf32>
    %c0_6 = arith.constant 0 : index
    %c0_7 = arith.constant 0 : index
    %11 = vector.load %arg4[%c0_6, %c0_7] : memref<32x32xbf16, #tpu.memory_space<vmem>>, vector<32x32xbf16>
    %c0_8 = arith.constant 0 : index
    %c0_9 = arith.constant 0 : index
    %12 = vector.load %arg5[%c0_8, %c0_9] : memref<32x1xf32, #tpu.memory_space<vmem>>, vector<32x1xf32>
    %13 = arith.truncf %10 : vector<32x128xf32> to vector<32x128xbf16>
    %cst_10 = arith.constant dense<0.000000e+00> : vector<32x128xf32>
    %14 = tpu.matmul %11, %13, %cst_10 {dimension_numbers = #tpu.dot_dimension_numbers<[1], [0], [0], [1], [0, 0, 1, 1], [], []>} : vector<32x32xbf16>, vector<32x128xbf16>, vector<32x128xf32> -> vector<32x128xf32>
    %15 = vector.broadcast %12 : vector<32x1xf32> to vector<32x128xf32>
    %16 = arith.addf %14, %15 : vector<32x128xf32>
    %cst_11 = arith.constant 0.000000e+00 : f32
    %17 = vector.broadcast %cst_11 : f32 to vector<32x128xf32>
    %18 = arith.maximumf %16, %17 : vector<32x128xf32>
    %c0_12 = arith.constant 0 : index
    %c0_13 = arith.constant 0 : index
    %19 = vector.load %arg6[%c0_12, %c0_13] : memref<32x32xbf16, #tpu.memory_space<vmem>>, vector<32x32xbf16>
    %c0_14 = arith.constant 0 : index
    %c0_15 = arith.constant 0 : index
    %20 = vector.load %arg7[%c0_14, %c0_15] : memref<32x1xf32, #tpu.memory_space<vmem>>, vector<32x1xf32>
    %21 = arith.truncf %18 : vector<32x128xf32> to vector<32x128xbf16>
    %cst_16 = arith.constant dense<0.000000e+00> : vector<32x128xf32>
    %22 = tpu.matmul %19, %21, %cst_16 {dimension_numbers = #tpu.dot_dimension_numbers<[1], [0], [0], [1], [0, 0, 1, 1], [], []>} : vector<32x32xbf16>, vector<32x128xbf16>, vector<32x128xf32> -> vector<32x128xf32>
    %23 = vector.broadcast %20 : vector<32x1xf32> to vector<32x128xf32>
    %24 = arith.addf %22, %23 : vector<32x128xf32>
    %cst_17 = arith.constant 0.000000e+00 : f32
    %25 = vector.broadcast %cst_17 : f32 to vector<32x128xf32>
    %26 = arith.maximumf %24, %25 : vector<32x128xf32>
    %c0_18 = arith.constant 0 : index
    %c0_19 = arith.constant 0 : index
    %27 = vector.load %arg8[%c0_18, %c0_19] : memref<1x32xbf16, #tpu.memory_space<vmem>>, vector<1x32xbf16>
    %c0_20 = arith.constant 0 : index
    %c0_21 = arith.constant 0 : index
    %28 = vector.load %arg9[%c0_20, %c0_21] : memref<1x1xf32, #tpu.memory_space<vmem>>, vector<1x1xf32>
    %29 = arith.truncf %26 : vector<32x128xf32> to vector<32x128xbf16>
    %cst_22 = arith.constant dense<0.000000e+00> : vector<1x128xf32>
    %30 = tpu.matmul %27, %29, %cst_22 {dimension_numbers = #tpu.dot_dimension_numbers<[1], [0], [0], [1], [0, 0, 1, 1], [], []>} : vector<1x32xbf16>, vector<32x128xbf16>, vector<1x128xf32> -> vector<1x128xf32>
    %31 = vector.broadcast %28 : vector<1x1xf32> to vector<1x128xf32>
    %32 = arith.addf %30, %31 : vector<1x128xf32>
    %33 = arith.mulf %32, %32 : vector<1x128xf32>
    %cst_23 = arith.constant 0.00999999977 : f32
    %34 = vector.broadcast %cst_23 : f32 to vector<1x128xf32>
    %35 = arith.addf %34, %33 : vector<1x128xf32>
    %36 = tpu.reciprocal %35 {approx = true} : vector<1x128xf32> -> vector<1x128xf32>
    %37 = arith.mulf %2, %36 : vector<1x128xf32>
    %c0_24 = arith.constant 0 : index
    %c0_25 = arith.constant 0 : index
    %38 = vector.load %arg10[%c0_24, %c0_25] : memref<1x128xf32, #tpu.memory_space<vmem>>, vector<1x128xf32>
    tpu.vector_store %arg10[%c0_24, %c0_25], %37 {strides = array<i32>} : memref<1x128xf32, #tpu.memory_space<vmem>>, vector<1x128xf32>,
    return
  }
  func.func @transform_0(%arg0: i32) -> (i32, i32) {
    %c0_i32 = arith.constant 0 : i32
    %c0_i32_0 = arith.constant 0 : i32
    return %arg0, %c0_i32 : i32, i32
  }
  func.func @transform_1(%arg0: i32) -> (i32, i32) {
    %c0_i32 = arith.constant 0 : i32
    %c0_i32_0 = arith.constant 0 : i32
    %c0_i32_1 = arith.constant 0 : i32
    return %c0_i32, %c0_i32_0 : i32, i32
  }
  func.func @transform_2(%arg0: i32) -> (i32, i32) {
    %c0_i32 = arith.constant 0 : i32
    %c0_i32_0 = arith.constant 0 : i32
    %c0_i32_1 = arith.constant 0 : i32
    return %c0_i32, %c0_i32_0 : i32, i32
  }
  func.func @transform_3(%arg0: i32) -> (i32, i32) {
    %c0_i32 = arith.constant 0 : i32
    %c0_i32_0 = arith.constant 0 : i32
    %c0_i32_1 = arith.constant 0 : i32
    return %c0_i32, %c0_i32_0 : i32, i32
  }
  func.func @transform_4(%arg0: i32) -> (i32, i32) {
    %c0_i32 = arith.constant 0 : i32
    %c0_i32_0 = arith.constant 0 : i32
    %c0_i32_1 = arith.constant 0 : i32
    return %c0_i32, %c0_i32_0 : i32, i32
  }
  func.func @transform_5(%arg0: i32) -> (i32, i32) {
    %c0_i32 = arith.constant 0 : i32
    %c0_i32_0 = arith.constant 0 : i32
    %c0_i32_1 = arith.constant 0 : i32
    return %c0_i32, %c0_i32_0 : i32, i32
  }
  func.func @transform_6(%arg0: i32) -> (i32, i32) {
    %c0_i32 = arith.constant 0 : i32
    %c0_i32_0 = arith.constant 0 : i32
    %c0_i32_1 = arith.constant 0 : i32
    return %c0_i32, %c0_i32_0 : i32, i32
  }
  func.func @transform_7(%arg0: i32) -> (i32, i32) {
    %c0_i32 = arith.constant 0 : i32
    %c0_i32_0 = arith.constant 0 : i32
    %c0_i32_1 = arith.constant 0 : i32
    return %c0_i32, %c0_i32_0 : i32, i32
  }
  func.func @transform_8(%arg0: i32) -> (i32, i32) {
    %c0_i32 = arith.constant 0 : i32
    %c0_i32_0 = arith.constant 0 : i32
    %c0_i32_1 = arith.constant 0 : i32
    return %c0_i32, %c0_i32_0 : i32, i32
  }
  func.func @transform_9(%arg0: i32) -> (i32, i32) {
    %c0_i32 = arith.constant 0 : i32
    %c0_i32_0 = arith.constant 0 : i32
    return %c0_i32, %arg0 : i32, i32
  }
}

</mosaic_0001>

<bundles_post_ra>
// kernel: flow_lr_flow_forward.1
= control target key start
LH: loop header
LB: loop body
LE: loop exit
PB: predicated region body
PF: predicated region fallthrough
CT: control target
= control target key end

     0   :  { %s948_s11 = smov 0   ;;  %s1057_s0 = inlined_call_operand.vmem [shape: f32[256,5], index: 0, kind: input, shape index: {}]   ;;  %s1058_s1 = inlined_call_operand.vmem [shape: bf16[32,5], index: 1, kind: input, shape index: {}]   ;;  %s1059_s2 = inlined_call_operand.vmem [shape: f32[32,1], index: 2, kind: input, shape index: {}]   ;;  %s1060_s3 = inlined_call_operand.vmem [shape: bf16[32,32], index: 3, kind: input, shape index: {}]   ;;  %s1061_s4 = inlined_call_operand.vmem [shape: f32[32,1], index: 4, kind: input, shape index: {}]   ;;  %s1062_s5 = inlined_call_operand.vmem [shape: bf16[32,32], index: 5, kind: input, shape index: {}]   ;;  %s1063_s6 = inlined_call_operand.vmem [shape: f32[32,1], index: 6, kind: input, shape index: {}]   ;;  %s1064_s7 = inlined_call_operand.vmem [shape: bf16[1,32], index: 7, kind: input, shape index: {}]   ;;  %s1065_s8 = inlined_call_operand.<no memory space> [shape: f32[1,1], index: 8, kind: input, shape index: {}]   ;;  %s1066_s9 = inlined_call_operand.vmem [shape: f32[1,256], index: 9, kind: output, shape index: {}]  }
   0x1   :  { %v14_v0 = vstv %s1065_s8 }
   0x2   :  { %15 = vst [vmem:[#allocation2] sm:$0x1] %v14_v0 }
   0x3 LB: > { %s954_s12 = sadd.s32 4294967295, %s889_s11   ;;  %p799_p0 = scmp.ge.s32.totalorder %s889_s11, 1  ;;  %s889_s11 = sphi %s948_s11, %s21_s11  }
   0x4   : > { %p290_p1 = scmp.lt.s32.totalorder %s889_s11, 3 }
   0x6   : > { %p291_p2 = pnand %p799_p0, %p290_p1 }
   0x7   : > { %s800_s13 = sshll.u32 (!%p291_p2), %s954_s12, 4  ;;  %v875_v4 = vld [vmem:[%s1058_s1] sm:$0xff] (!%p291_p2)   ;;  %vm421_vm0 = vcmask (!%p291_p2), 39936   ;;  %v891_v7 = vmov (!%p291_p2), 0   ;;  %v387_v8 = vld [vmem:[%s1059_s2 + $0x8] sm:$0xff] (!%p291_p2)  ;;  %v388_v10 = vld [vmem:[%s1059_s2 + $0x10] sm:$0xff] (!%p291_p2) }
   0x8   : > { %294 = sbr.rel (%p291_p2) target bundleno = 1074 (0x432), region = 56  ;;  %p325_p3 = scmp.lt.s32.totalorder (!%p291_p2), %s800_s13, 31  ;;  %833 = vmatprep.mubr.msk.bf16.mxu0 (!%p291_p2), %vm421_vm0, %v875_v4  ;;  %v386_v6 = vld [vmem:[%s1059_s2] sm:$0xff] (!%p291_p2)  ;;  %873 = vset.pattern.permute.xlu1 (!%p291_p2), %v891_v7  ;;  %v389_v12 = vld [vmem:[%s1059_s2 + $0x18] sm:$0xff] (!%p291_p2)  ;;  %v493_v16 = vld [vmem:[%s1061_s4 + $0x8] sm:$0xff] (!%p291_p2)  ;;  %vm428_vm1 = vcmask (!%p291_p2), 1041408  }
   0x9   : > { %393 = vperm.xlu1 (!%p291_p2), %873, %v386_v6   ;;  %v492_v14 = vld [vmem:[%s1061_s4] sm:$0xff] (!%p291_p2)  ;;  %v494_v18 = vld [vmem:[%s1061_s4 + $0x10] sm:$0xff] (!%p291_p2)  ;;  %v495_v20 = vld [vmem:[%s1061_s4 + $0x18] sm:$0xff] (!%p291_p2)  ;;  %vm429_vm2 = vcmask (!%p291_p2), 1042432   ;;  %v892_v32 = vmov (!%p291_p2), 65535   ;;  %vm528_vm3 = vcmask (!%p291_p2), 261120  }
   0xa   : > { %v592_v22 = vld [vmem:[%s1063_s6] sm:$0xff] (!%p291_p2)  ;;  %v593_v24 = vld [vmem:[%s1063_s6 + $0x8] sm:$0xff] (!%p291_p2)  ;;  %v594_v26 = vld [vmem:[%s1063_s6 + $0x10] sm:$0xff] (!%p291_p2)  ;;  %v430_v33 = vsel (!%p291_p2), %vm428_vm1, 4294967295, %v892_v32  ;;  %vm894_vm4 = vmmov (!%p291_p2), 0   ;;  %p330_p4 = scmp.lt.s32.totalorder (!%p291_p2), %s954_s12, 1 }
   0xb   : > { %v595_v28 = vld [vmem:[%s1063_s6 + $0x18] sm:$0xff] (!%p291_p2)  ;;  %v688_v30 = vld [vmem:[#allocation2] sm:$0x1] (!%p291_p2)  ;;  %v431_v35 = vsel (!%p291_p2), %vm429_vm2, %v430_v33, 0  ;;  %v876_v38 = vld [vmem:[%s1058_s1 + $0x8] sm:$0xff] (!%p291_p2)  }
   0xc   : > { %v877_v39 = vld [vmem:[%s1060_s3] sm:$0xff] (!%p291_p2)   ;;  %v878_v58 = vld [vmem:[%s1060_s3 + $0x8] sm:$0xff] (!%p291_p2)  }
   0xd   : > { %398 = vperm.xlu1 (!%p291_p2), %873, %v387_v8   ;;  %841 = vmatprep.mubr.msk.bf16.mxu1 (!%p291_p2), %vm528_vm3, %v877_v39  ;;  %v879_v59 = vld [vmem:[%s1062_s5] sm:$0xff] (!%p291_p2)  }
   0xf   : > { %s1068_s13 = smov (!%p325_p3, %s800_s13), 31  ;;  %s1070_s12 = smov (!%p330_p4, %s954_s12), 1 }
  0x10   : > { %s801_s8 = sshll.u32 %s1068_s13, 3  ;;  %s332_s18 = scalar_lea.vmem %s1066_s9, %s1070_s12 }
  0x11   : > { %s962_s16 = scalar_lea.vmem %s1057_s0, %s801_s8  ;;  %403 = vperm.xlu1 %873, %v388_v10  }
  0x12   : > { %v334_v1 = vld [vmem:[%s962_s16] sm:$0xff]  ;;  %v335_v2 = vld [vmem:[%s962_s16 + $0x8] sm:$0xff]  ;;  %v336_v3 = vld [vmem:[%s962_s16 + $0x10] sm:$0xff] }
  0x13   : > { %350 = vxpose.xlu0.b32.start [1/16] (narrow) %v334_v1, 8  ;;  %v337_v5 = vld [vmem:[%s962_s16 + $0x18] sm:$0xff]  ;;  %v338_v9 = vld [vmem:[%s962_s16 + $0x20] sm:$0xff]  ;;  %v339_v11 = vld [vmem:[%s962_s16 + $0x28] sm:$0xff] }
  0x14   : > { %v340_v13 = vld [vmem:[%s962_s16 + $0x30] sm:$0xff]  ;;  %v341_v15 = vld [vmem:[%s962_s16 + $0x38] sm:$0xff]  ;;  %v342_v17 = vld [vmem:[%s962_s16 + $0x40] sm:$0xff] }
  0x15   : > { %408 = vperm.xlu1 %873, %v389_v12   ;;  %v343_v19 = vld [vmem:[%s962_s16 + $0x48] sm:$0xff]  ;;  %v344_v21 = vld [vmem:[%s962_s16 + $0x50] sm:$0xff]  ;;  %v345_v23 = vld [vmem:[%s962_s16 + $0x58] sm:$0xff] }
  0x16   : > { %v346_v25 = vld [vmem:[%s962_s16 + $0x60] sm:$0xff]  ;;  %v347_v27 = vld [vmem:[%s962_s16 + $0x68] sm:$0xff]  ;;  %v348_v29 = vld [vmem:[%s962_s16 + $0x70] sm:$0xff] }
  0x17   : > { %351 = vxpose.xlu0.b32.cont [2/16] (narrow) %v335_v2, 8  ;;  %v349_v31 = vld [vmem:[%s962_s16 + $0x78] sm:$0xff] }
  0x19   : > { %500 = vperm.xlu1 %873, %v492_v14   ;;  %v880_v14 = vld [vmem:[%s1062_s5 + $0x8] sm:$0xff]  }
  0x1b   : > { %352 = vxpose.xlu0.b32.cont [3/16] (narrow) %v336_v3, 8 }
  0x1d   : > { %505 = vperm.xlu1 %873, %v493_v16  }
  0x1f   : > { %353 = vxpose.xlu0.b32.cont [4/16] (narrow) %v337_v5, 8 }
  0x21   : > { %510 = vperm.xlu1 %873, %v494_v18  }
  0x23   : > { %354 = vxpose.xlu0.b32.cont [5/16] (narrow) %v338_v9, 8 }
  0x25   : > { %515 = vperm.xlu1 %873, %v495_v20  }
  0x27   : > { %355 = vxpose.xlu0.b32.cont [6/16] (narrow) %v339_v11, 8 }
  0x29   : > { %600 = vperm.xlu1 %873, %v592_v22  }
  0x2b   : > { %356 = vxpose.xlu0.b32.cont [7/16] (narrow) %v340_v13, 8 }
  0x2d   : > { %605 = vperm.xlu1 %873, %v593_v24  }
  0x2f   : > { %357 = vxpose.xlu0.b32.cont [8/16] (narrow) %v341_v15, 8  ;;  %v893_v15 = vmov 0.0  }
  0x31   : > { %610 = vperm.xlu1 %873, %v594_v26  }
  0x33   : > { %358 = vxpose.xlu0.b32.cont [9/16] (narrow) %v342_v17, 8 }
  0x35   : > { %615 = vperm.xlu1 %873, %v595_v28  }
  0x37   : > { %359 = vxpose.xlu0.b32.cont [10/16] (narrow) %v343_v19, 8 }
  0x39   : > { %693 = vperm.xlu1 %873, %v688_v30  }
  0x3b   : > { %360 = vxpose.xlu0.b32.cont [11/16] (narrow) %v344_v21, 8 }
  0x3f   : > { %361 = vxpose.xlu0.b32.cont [12/16] (narrow) %v345_v23, 8 }
  0x43   : > { %362 = vxpose.xlu0.b32.cont [13/16] (narrow) %v346_v25, 8 }
  0x47   : > { %363 = vxpose.xlu0.b32.cont [14/16] (narrow) %v347_v27, 8 }
  0x4b   : > { %364 = vxpose.xlu0.b32.cont [15/16] (narrow) %v348_v29, 8 }
  0x4f   : > { %365 = vxpose.xlu0.b32.end [16/16] (narrow) %v349_v31, 8 }
  0x78   : > { %874 = vset.pattern.permute.xlu0 %v891_v7 }
  0x88   : > { %v394_v40 = vpop.permute.xlu1 %393 }
  0x8c   : > { %v399_v41 = vpop.permute.xlu1 %398 }
  0x90   : > { %v404_v42 = vpop.permute.xlu1 %403 }
  0x93   : > { %v1020_v34 = vpop.trf.xlu0 }
  0x94   : > { %v390_v36 = vpack.c.bf16 %v1020_v34, %v1020_v34  ;;  %v409_v46 = vpop.permute.xlu1 %408 }
  0x96   : > { %v433_v37 = vand.u32 %v431_v35, %v390_v36  ;;  %v687_v35 = vld [vmem:[%s1064_s7] sm:$0x1]  ;;  %v696_v36 = vlaneseq }
  0x98   : > { %831 = vmatprep.subr.bf16.mxu0 %v433_v37  ;;  %v501_v60 = vpop.permute.xlu1 %500 }
  0x99   : > { %832 = vmatpush3.bf16.msra.mxu0 %v433_v37  ;;  %v697_v37 = vshrl.u32 %v696_v36, 7 }
  0x9c   : > { %834 = vmatmul.mubr.msk.bf16.vlgmr.msra.gmra.mrb[0].mxu0 %vm421_vm0, %v876_v38  ;;  %v506_v61 = vpop.permute.xlu1 %505  ;;  %v698_v38 = vsub.s32 0, %v697_v37 }
  0x9d   : > { %849 = vmatprep.mubr.msk.bf16.mxu0 %vm528_vm3, %v879_v59 }
  0xa0   : > { %v511_v62 = vpop.permute.xlu1 %510 }
  0xa4   : > { %v516_v2 = vpop.permute.xlu1 %515 }
  0xa8   : > { %v601_v16 = vpop.permute.xlu1 %600 }
  0xac   : > { %v606_v17 = vpop.permute.xlu1 %605 }
  0xb0   : > { %v611_v18 = vpop.permute.xlu1 %610 }
  0xb4   : > { %v616_v22 = vpop.permute.xlu1 %615 }
  0xb8   : > { %v694_v39 = vpop.permute.xlu1 %693 }
 0x16f   : > { %v835_v43 = vpop.f32.mrb[0].mxu0 }
 0x170   : > { %v478_v44 = vadd.f32 %v835_v43, %v404_v42  ;;  %v469_v45 = vpop.f32.mrb[1].mxu0 }
 0x171   : > { %v470_v47 = vadd.f32 %v469_v45, %v394_v40  ;;  %v836_v48 = vpop.f32.mrb[2].mxu0  ;;  %v699_v40 = vrot.slane %v694_v39, %v698_v38 }
 0x172   : > { %v481_v49 = vadd.f32 %v836_v48, %v409_v46  ;;  %v472_v50 = vpop.f32.mrb[3].mxu0  ;;  %v486_v52 = vmax.f32 %v478_v44, 0.0 }
 0x173   : > { %v473_v51 = vadd.f32 %v472_v50, %v399_v41  ;;  %v484_v54 = vmax.f32 %v470_v47, 0.0 }
 0x174   : > { %v487_v53 = vmax.f32 %v481_v49, 0.0 }
 0x175   : > { %v485_v55 = vmax.f32 %v473_v51, 0.0 }
 0x176   : > { %v497_v56 = vpack.c.bf16 %v487_v53, %v486_v52 }
 0x177   : > { %v496_v57 = vpack.c.bf16 %v485_v55, %v484_v54 }
 0x179   : > { %837 = vmatprep.subr.bf16.mxu1 %v496_v57 }
 0x17a   : > { %838 = vmatpush3.bf16.msra.mxu1 %v496_v57 }
 0x17b   : > { %839 = vmatprep.subr.bf16.mxu1 %v497_v56 }
 0x17e   : > { %840 = vmatpush3.bf16.msra.mxu1 %v497_v56 }
 0x17f   : > { %853 = vmatprep.subr.bf16.mxu1 %v893_v15 }
 0x181   : > { %842 = vmatmul.mubr.msk.bf16.vlgmr.msra.gmra.mrb[0].mxu1 %vm528_vm3, %v878_v58 }
 0x182   : > { %857 = vmatprep.mubr.msk.bf16.mxu1 %vm894_vm4, %v893_v15 }
 0x254   : > { %v843_v63 = vpop.f32.mrb[0].mxu1 }
 0x255   : > { %v578_v0 = vadd.f32 %v843_v63, %v511_v62  ;;  %v569_v1 = vpop.f32.mrb[1].mxu1 }
 0x256   : > { %v570_v3 = vadd.f32 %v569_v1, %v501_v60  ;;  %v844_v4 = vpop.f32.mrb[2].mxu1 }
 0x257   : > { %v581_v5 = vadd.f32 %v844_v4, %v516_v2  ;;  %v572_v6 = vpop.f32.mrb[3].mxu1  ;;  %v586_v8 = vmax.f32 %v578_v0, 0.0 }
 0x258   : > { %v573_v7 = vadd.f32 %v572_v6, %v506_v61  ;;  %v584_v10 = vmax.f32 %v570_v3, 0.0 }
 0x259   : > { %v587_v9 = vmax.f32 %v581_v5, 0.0 }
 0x25a   : > { %v585_v11 = vmax.f32 %v573_v7, 0.0 }
 0x25b   : > { %v597_v12 = vpack.c.bf16 %v587_v9, %v586_v8 }
 0x25c   : > { %v596_v13 = vpack.c.bf16 %v585_v11, %v584_v10 }
 0x25e   : > { %845 = vmatprep.subr.bf16.mxu0 %v596_v13 }
 0x25f   : > { %846 = vmatpush3.bf16.msra.mxu0 %v596_v13 }
 0x260   : > { %847 = vmatprep.subr.bf16.mxu0 %v597_v12 }
 0x263   : > { %848 = vmatpush3.bf16.msra.mxu0 %v597_v12 }
 0x266   : > { %850 = vmatmul.mubr.msk.bf16.vlgmr.msra.gmra.mrb[4].mxu0 %vm528_vm3, %v880_v14 }
 0x339   : > { %v851_v19 = vpop.f32.mrb[4].mxu0 }
 0x33a   : > { %v677_v20 = vadd.f32 %v851_v19, %v611_v18  ;;  %v668_v21 = vpop.f32.mrb[5].mxu0 }
 0x33b   : > { %v669_v23 = vadd.f32 %v668_v21, %v601_v16  ;;  %v852_v24 = vpop.f32.mrb[6].mxu0 }
 0x33c   : > { %v680_v25 = vadd.f32 %v852_v24, %v616_v22  ;;  %v671_v26 = vpop.f32.mrb[7].mxu0  ;;  %v685_v28 = vmax.f32 %v677_v20, 0.0 }
 0x33d   : > { %v672_v27 = vadd.f32 %v671_v26, %v606_v17  ;;  %v683_v30 = vmax.f32 %v669_v23, 0.0 }
 0x33e   : > { %v686_v29 = vmax.f32 %v680_v25, 0.0 }
 0x33f   : > { %v684_v31 = vmax.f32 %v672_v27, 0.0 }
 0x340   : > { %v690_v32 = vpack.c.bf16 %v686_v29, %v685_v28 }
 0x341   : > { %v689_v33 = vpack.c.bf16 %v684_v31, %v683_v30 }
 0x343   : > { %854 = vmatpush3.bf16.msra.mxu1 %v689_v33 }
 0x344   : > { %855 = vmatprep.subr.bf16.mxu1 %v893_v15 }
 0x347   : > { %856 = vmatpush3.bf16.msra.mxu1 %v690_v32 }
 0x34a   : > { %858 = vmatmul.mubr.msk.bf16.vlgmr.msra.gmra.mrb[4].mxu1 %vm528_vm3, %v687_v35 }
 0x41d   : > { %v737_v41 = vpop.f32.mrb[4].mxu1 }
 0x41e   : > { %v738_v42 = vadd.f32 %v737_v41, %v699_v40  ;;  %v859_v43 = vpop.f32.mrb[5].mxu1 }
 0x41f   : > { %v740_v44 = vpop.f32.mrb[6].mxu1 }
 0x420   : > { %v743_v45 = vmul.f32 %v738_v42, %v738_v42  ;;  %v860_v46 = vpop.f32.mrb[7].mxu1 }
 0x422   : > { %v744_v47 = vadd.f32 0.01, %v743_v45 }
 0x424   : > { %881 = vrcp.f32 %v744_v47 }
 0x42e   : > { %v882_v48 = vpop.eup %881 }
 0x42f   : > { %v746_v49 = vmul.f32 %v882_v48, %v1020_v34 }
 0x431   : > { %747 = vst [vmem:[%s332_s18] sm:$0x1] %v746_v49 }
 0x432 PF: > { %s21_s11 = sadd.s32 1, %s889_s11  }
 0x433   : > { %p18_p5 = scmp.ge.s32.totalorder %s21_s11, 4  }
 0x435   :  { %20 = sbr.rel (!%p18_p5) target bundleno = 3 (0x3), region = 86 }

</bundles_post_ra>
